<compile_context>
chip_gen: v7x
topology: tpu7x:2x2x1
jax: 0.10.0
libtpu: 0.0.40
codegen_flags: <defaults>
</compile_context>

<pallas_src>
import functools

import jax
import jax.numpy as jnp
from jax.experimental import pallas as pl
from jax.experimental.pallas import tpu as pltpu


COMPUTE_DTYPE = jnp.bfloat16      # MXU-native on v5e/v6e/v7x; accumulation stays f32
N_OUT_PAD = 128                   # lane-dense output / W3 width
RESIDENT_W1_BYTES = 16 * 1024 * 1024   # conservative "keep W1 resident" budget (all gens)
TK_MAX = 2048                     # K-slab size when W1 must be streamed


def _round_up(x: int, m: int) -> int:
    return ((x + m - 1) // m) * m


def _choose_k_tiling(f_in: int, hidden: int):
    """Return (tk, F_pad, resident). Idempotent when called again with F_pad."""
    f128 = _round_up(f_in, 128)
    if f128 * hidden * jnp.dtype(COMPUTE_DTYPE).itemsize <= RESIDENT_W1_BYTES:
        return f128, f128, True          # whole reduction in one step, W1 resident
    tk = TK_MAX
    return tk, _round_up(f128, tk), False


# ---------------------------------------------------------------------------
# Kernels
# ---------------------------------------------------------------------------

def _disc_kernel_resident(x_ref, w1_ref, b1_ref, w2_ref, b2_ref, w3_ref, b3_ref,
                          o_ref):
    """Fully fused MLP; whole W1 resident in VMEM, grid = (batch_tiles,)."""
    x = x_ref[...].astype(w1_ref.dtype)                    # in-kernel f32 -> bf16 cast
    h1 = jnp.dot(x, w1_ref[...], preferred_element_type=jnp.float32) + b1_ref[...]
    h1 = jnp.maximum(h1, 0.0).astype(w2_ref.dtype)
    h2 = jnp.dot(h1, w2_ref[...], preferred_element_type=jnp.float32) + b2_ref[...]
    h2 = jnp.maximum(h2, 0.0).astype(w3_ref.dtype)
    out = jnp.dot(h2, w3_ref[...], preferred_element_type=jnp.float32) + b3_ref[...]
    o_ref[...] = out.astype(o_ref.dtype)


def _disc_kernel_ktiled(x_ref, w1_ref, b1_ref, w2_ref, b2_ref, w3_ref, b3_ref,
                        o_ref, acc_ref):
    """Layer-1 reduction streamed over the trailing K grid axis; acc in f32 VMEM."""
    k = pl.program_id(1)

    @pl.when(k == 0)
    def _():
        acc_ref[...] = jnp.zeros_like(acc_ref)

    acc_ref[...] += jnp.dot(x_ref[...].astype(w1_ref.dtype), w1_ref[...],
                            preferred_element_type=jnp.float32)

    @pl.when(k == pl.num_programs(1) - 1)
    def _():
        # Reuse the accumulator in place for bias + ReLU (no extra f32 temporary).
        acc_ref[...] = jnp.maximum(acc_ref[...] + b1_ref[...], 0.0)
        h1 = acc_ref[...].astype(w2_ref.dtype)
        h2 = jnp.dot(h1, w2_ref[...], preferred_element_type=jnp.float32) + b2_ref[...]
        h2 = jnp.maximum(h2, 0.0).astype(w3_ref.dtype)
        out = jnp.dot(h2, w3_ref[...], preferred_element_type=jnp.float32) + b3_ref[...]
        o_ref[...] = out.astype(o_ref.dtype)


# ---------------------------------------------------------------------------
# Parameter init / one-time preprocessing
# ---------------------------------------------------------------------------

def init_discriminator_params(key, input_features, hidden_dim=256):
    """nn.Linear-style init (uniform +-1/sqrt(fan_in)). W as (in, out), b as (1, out)."""
    dims = [(input_features, hidden_dim), (hidden_dim, hidden_dim), (hidden_dim, 2)]
    params = []
    for (fan_in, fan_out) in dims:
        key, kw, kb = jax.random.split(key, 3)
        bound = 1.0 / (fan_in ** 0.5)
        w = jax.random.uniform(kw, (fan_in, fan_out), jnp.float32, -bound, bound)
        b = jax.random.uniform(kb, (1, fan_out), jnp.float32, -bound, bound)
        params += [w, b]
    return tuple(params)


def prepare_discriminator_params(params):
    """One-time: cast weights to bf16, pad F to the kernel's K alignment, pad n_out->128."""
    w1, b1, w2, b2, w3, b3 = params
    f_in, hidden = w1.shape
    n_out = w3.shape[1]

    _, f_pad, _ = _choose_k_tiling(f_in, hidden)

    w1c = w1.astype(COMPUTE_DTYPE)
    if f_pad != f_in:
        w1c = jnp.pad(w1c, ((0, f_pad - f_in), (0, 0)))
    w2c = w2.astype(COMPUTE_DTYPE)
    w3c = jnp.pad(w3.astype(COMPUTE_DTYPE), ((0, 0), (0, N_OUT_PAD - n_out)))

    b1c = b1.astype(jnp.float32)
    b2c = b2.astype(jnp.float32)
    b3c = jnp.pad(b3.astype(jnp.float32), ((0, 0), (0, N_OUT_PAD - n_out)))

    return (w1c, b1c, w2c, b2c, w3c, b3c)


# ---------------------------------------------------------------------------
# Forward
# ---------------------------------------------------------------------------

@functools.partial(jax.jit, static_argnames=("n_out", "tm"))
def discriminator_forward(x, prepared_params, *, n_out=2, tm=256):
    """x: (B, ...) -> logits (B, n_out). prepared_params from prepare_discriminator_params."""
    w1c, b1c, w2c, b2c, w3c, b3c = prepared_params
    f_pad, hidden = w1c.shape
    n_out_pad = w3c.shape[1]

    B = x.shape[0]
    x2d = x.reshape(B, -1)                     # kept in its input dtype; cast in-kernel
    f_in = x2d.shape[1]
    assert f_in <= f_pad, (f_in, f_pad)

    # Batch tile: MXU-filling 256 when the batch is big enough, otherwise just
    # a sublane-aligned cover of B.
    tm_eff = min(tm, _round_up(B, 16))
    B_pad = _round_up(B, tm_eff)
    if B_pad != B or f_pad != f_in:
        x2d = jnp.pad(x2d, ((0, B_pad - B), (0, f_pad - f_in)))

    tk, _, resident = _choose_k_tiling(f_pad, hidden)
    n_bt = B_pad // tm_eff

    x_itemsize = jnp.dtype(x2d.dtype).itemsize
    w_itemsize = jnp.dtype(COMPUTE_DTYPE).itemsize

    if resident:
        grid = (n_bt,)
        in_specs = [
            pl.BlockSpec((tm_eff, f_pad), lambda i: (i, 0)),       # x: batch-tiled
            pl.BlockSpec((f_pad, hidden), lambda i: (0, 0)),       # W1: resident
            pl.BlockSpec((1, hidden), lambda i: (0, 0)),
            pl.BlockSpec((hidden, hidden), lambda i: (0, 0)),
            pl.BlockSpec((1, hidden), lambda i: (0, 0)),
            pl.BlockSpec((hidden, n_out_pad), lambda i: (0, 0)),
            pl.BlockSpec((1, n_out_pad), lambda i: (0, 0)),
        ]
        out_specs = pl.BlockSpec((tm_eff, n_out_pad), lambda i: (i, 0))
        scratch_shapes = []
        kernel = _disc_kernel_resident
        dim_sem = ("parallel",)
        w1_reads = 1
        acc_bytes = 0
    else:
        n_kt = f_pad // tk
        grid = (n_bt, n_kt)
        in_specs = [
            pl.BlockSpec((tm_eff, tk), lambda i, k: (i, k)),       # x: batch & K tiled
            pl.BlockSpec((tk, hidden), lambda i, k: (k, 0)),       # W1: streamed slabs
            pl.BlockSpec((1, hidden), lambda i, k: (0, 0)),
            pl.BlockSpec((hidden, hidden), lambda i, k: (0, 0)),
            pl.BlockSpec((1, hidden), lambda i, k: (0, 0)),
            pl.BlockSpec((hidden, n_out_pad), lambda i, k: (0, 0)),
            pl.BlockSpec((1, n_out_pad), lambda i, k: (0, 0)),
        ]
        out_specs = pl.BlockSpec((tm_eff, n_out_pad), lambda i, k: (i, 0))
        scratch_shapes = [pltpu.VMEM((tm_eff, hidden), jnp.float32)]
        kernel = _disc_kernel_ktiled
        dim_sem = ("parallel", "arbitrary")
        w1_reads = n_bt                                            # W1 re-streamed per batch tile
        acc_bytes = tm_eff * hidden * 4

    # VMEM budget derived from the actual tile footprint (double-buffered inputs/output),
    # with 2x slack + 2 MiB headroom; capped well under v7x's 64 MiB physical VMEM.
    tile_bytes = (
        2 * tm_eff * tk * x_itemsize
        + 2 * tk * hidden * w_itemsize
        + 2 * (hidden * hidden + hidden * n_out_pad) * w_itemsize
        + 2 * (2 * hidden + n_out_pad) * 4
        + 2 * tm_eff * n_out_pad * 4
        + acc_bytes
    )
    vmem_limit = min(max(2 * tile_bytes + (2 << 20), 8 << 20), 40 << 20)

    flops = 2 * B_pad * (f_pad * hidden + hidden * hidden + hidden * n_out_pad)
    bytes_accessed = (
        B_pad * f_pad * x_itemsize                                  # x (in-kernel dtype)
        + w1_reads * f_pad * hidden * w_itemsize                    # W1 (per batch tile)
        + (hidden * hidden + hidden * n_out_pad) * w_itemsize       # W2, W3 (once)
        + (2 * hidden + n_out_pad) * 4                              # biases
        + B_pad * n_out_pad * 4                                     # output
    )

    out = pl.pallas_call(
        kernel,
        out_shape=jax.ShapeDtypeStruct((B_pad, n_out_pad), jnp.float32),
        grid_spec=pltpu.PrefetchScalarGridSpec(
            num_scalar_prefetch=0,
            grid=grid,
            in_specs=in_specs,
            out_specs=out_specs,
            scratch_shapes=scratch_shapes,
        ),
        compiler_params=pltpu.CompilerParams(
            dimension_semantics=dim_sem,
            vmem_limit_bytes=int(vmem_limit),
        ),
        cost_estimate=pl.CostEstimate(
            flops=flops, transcendentals=0, bytes_accessed=bytes_accessed),
    )(x2d, w1c, b1c, w2c, b2c, w3c, b3c)

    return out[:B, :n_out]


# ---------------------------------------------------------------------------
# Self-test
# ---------------------------------------------------------------------------

if __name__ == "__main__":
    key = jax.random.PRNGKey(0)
    k_x, k_p = jax.random.split(key)

    # Small shapes: batch=2, channels=4, spatial=16 -> input_features = 4*16*16 = 1024
    B, C, Hs, Ws = 2, 4, 16, 16
    hidden_dim = 32
    x = jax.random.normal(k_x, (B, C, Hs, Ws), jnp.float32)

    raw_params = init_discriminator_params(k_p, input_features=C * Hs * Ws,
                                           hidden_dim=hidden_dim)
    prepared = prepare_discriminator_params(raw_params)   # one-time cast/pad

    out = discriminator_forward(x, prepared)
    out = jax.block_until_ready(out)
    assert out.shape == (B, 2), out.shape

    # Matched-precision pure-JAX reference (bf16 weights / in-layer casts, f32 accumulate).
    w1, b1, w2, b2, w3, b3 = raw_params
    xf = x.reshape(B, -1).astype(jnp.bfloat16)
    r = jnp.dot(xf, w1.astype(jnp.bfloat16), preferred_element_type=jnp.float32) + b1
    r = jnp.maximum(r, 0.0).astype(jnp.bfloat16)
    r = jnp.dot(r, w2.astype(jnp.bfloat16), preferred_element_type=jnp.float32) + b2
    r = jnp.maximum(r, 0.0).astype(jnp.bfloat16)
    ref = jnp.dot(r, w3.astype(jnp.bfloat16), preferred_element_type=jnp.float32) + b3

    assert jnp.allclose(out, ref, atol=1e-2, rtol=1e-2), (out, ref)

    print("KERNEL_OK")
</pallas_src>

<mosaic_0001>
module attributes {stable_mosaic.version = 11 : i64} {
  func.func @_disc_kernel_resident(%arg0: i32, %arg1: memref<16x1024xf32, #tpu.memory_space<vmem>>, %arg2: memref<1024x32xbf16, #tpu.memory_space<vmem>>, %arg3: memref<1x32xf32, #tpu.memory_space<vmem>>, %arg4: memref<32x32xbf16, #tpu.memory_space<vmem>>, %arg5: memref<1x32xf32, #tpu.memory_space<vmem>>, %arg6: memref<32x128xbf16, #tpu.memory_space<vmem>>, %arg7: memref<1x128xf32, #tpu.memory_space<vmem>>, %arg8: memref<16x128xf32, #tpu.memory_space<vmem>>) attributes {dimension_semantics = [#tpu.dimension_semantics<parallel>], iteration_bounds = array<i64: 1>, scalar_prefetch = 0 : i64, scratch_operands = 0 : i64, tpu.core_type = #tpu.core_type<tc>, window_params = [{transform_indices = @transform_0, window_bounds = array<i64: 16, 1024>}, {pipeline_mode = #tpu.pipeline_mode<synchronous>, transform_indices = @transform_1, window_bounds = array<i64: 1024, 32>}, {pipeline_mode = #tpu.pipeline_mode<synchronous>, transform_indices = @transform_2, window_bounds = array<i64: 1, 32>}, {pipeline_mode = #tpu.pipeline_mode<synchronous>, transform_indices = @transform_3, window_bounds = array<i64: 32, 32>}, {pipeline_mode = #tpu.pipeline_mode<synchronous>, transform_indices = @transform_4, window_bounds = array<i64: 1, 32>}, {pipeline_mode = #tpu.pipeline_mode<synchronous>, transform_indices = @transform_5, window_bounds = array<i64: 32, 128>}, {pipeline_mode = #tpu.pipeline_mode<synchronous>, transform_indices = @transform_6, window_bounds = array<i64: 1, 128>}, {transform_indices = @transform_7, window_bounds = array<i64: 16, 128>}]} {
    %c0 = arith.constant 0 : index
    %c0_0 = arith.constant 0 : index
    %0 = vector.load %arg1[%c0, %c0_0] : memref<16x1024xf32, #tpu.memory_space<vmem>>, vector<16x1024xf32>
    %1 = arith.truncf %0 : vector<16x1024xf32> to vector<16x1024xbf16>
    %c0_1 = arith.constant 0 : index
    %c0_2 = arith.constant 0 : index
    %2 = vector.load %arg2[%c0_1, %c0_2] : memref<1024x32xbf16, #tpu.memory_space<vmem>>, vector<1024x32xbf16>
    %cst = arith.constant dense<0.000000e+00> : vector<16x32xf32>
    %3 = tpu.matmul %1, %2, %cst {dimension_numbers = #tpu.dot_dimension_numbers<[1], [0], [0], [1], [0, 0, 1, 1], [], []>} : vector<16x1024xbf16>, vector<1024x32xbf16>, vector<16x32xf32> -> vector<16x32xf32>
    %c0_3 = arith.constant 0 : index
    %c0_4 = arith.constant 0 : index
    %4 = vector.load %arg3[%c0_3, %c0_4] : memref<1x32xf32, #tpu.memory_space<vmem>>, vector<1x32xf32>
    %5 = vector.broadcast %4 : vector<1x32xf32> to vector<16x32xf32>
    %6 = arith.addf %3, %5 : vector<16x32xf32>
    %cst_5 = arith.constant 0.000000e+00 : f32
    %7 = vector.broadcast %cst_5 : f32 to vector<16x32xf32>
    %8 = arith.maximumf %6, %7 : vector<16x32xf32>
    %9 = arith.truncf %8 : vector<16x32xf32> to vector<16x32xbf16>
    %c0_6 = arith.constant 0 : index
    %c0_7 = arith.constant 0 : index
    %10 = vector.load %arg4[%c0_6, %c0_7] : memref<32x32xbf16, #tpu.memory_space<vmem>>, vector<32x32xbf16>
    %cst_8 = arith.constant dense<0.000000e+00> : vector<16x32xf32>
    %11 = tpu.matmul %9, %10, %cst_8 {dimension_numbers = #tpu.dot_dimension_numbers<[1], [0], [0], [1], [0, 0, 1, 1], [], []>} : vector<16x32xbf16>, vector<32x32xbf16>, vector<16x32xf32> -> vector<16x32xf32>
    %c0_9 = arith.constant 0 : index
    %c0_10 = arith.constant 0 : index
    %12 = vector.load %arg5[%c0_9, %c0_10] : memref<1x32xf32, #tpu.memory_space<vmem>>, vector<1x32xf32>
    %13 = vector.broadcast %12 : vector<1x32xf32> to vector<16x32xf32>
    %14 = arith.addf %11, %13 : vector<16x32xf32>
    %cst_11 = arith.constant 0.000000e+00 : f32
    %15 = vector.broadcast %cst_11 : f32 to vector<16x32xf32>
    %16 = arith.maximumf %14, %15 : vector<16x32xf32>
    %17 = arith.truncf %16 : vector<16x32xf32> to vector<16x32xbf16>
    %c0_12 = arith.constant 0 : index
    %c0_13 = arith.constant 0 : index
    %18 = vector.load %arg6[%c0_12, %c0_13] : memref<32x128xbf16, #tpu.memory_space<vmem>>, vector<32x128xbf16>
    %cst_14 = arith.constant dense<0.000000e+00> : vector<16x128xf32>
    %19 = tpu.matmul %17, %18, %cst_14 {dimension_numbers = #tpu.dot_dimension_numbers<[1], [0], [0], [1], [0, 0, 1, 1], [], []>} : vector<16x32xbf16>, vector<32x128xbf16>, vector<16x128xf32> -> vector<16x128xf32>
    %c0_15 = arith.constant 0 : index
    %c0_16 = arith.constant 0 : index
    %20 = vector.load %arg7[%c0_15, %c0_16] : memref<1x128xf32, #tpu.memory_space<vmem>>, vector<1x128xf32>
    %21 = vector.broadcast %20 : vector<1x128xf32> to vector<16x128xf32>
    %22 = arith.addf %19, %21 : vector<16x128xf32>
    %c0_17 = arith.constant 0 : index
    %c0_18 = arith.constant 0 : index
    %23 = vector.load %arg8[%c0_17, %c0_18] : memref<16x128xf32, #tpu.memory_space<vmem>>, vector<16x128xf32>
    tpu.vector_store %arg8[%c0_17, %c0_18], %22 {strides = array<i32>} : memref<16x128xf32, #tpu.memory_space<vmem>>, vector<16x128xf32>,
    return
  }
  func.func @transform_0(%arg0: i32) -> (i32, i32) {
    %c0_i32 = arith.constant 0 : i32
    %c0_i32_0 = arith.constant 0 : i32
    return %arg0, %c0_i32 : i32, i32
  }
  func.func @transform_1(%arg0: i32) -> (i32, i32) {
    %c0_i32 = arith.constant 0 : i32
    %c0_i32_0 = arith.constant 0 : i32
    %c0_i32_1 = arith.constant 0 : i32
    return %c0_i32, %c0_i32_0 : i32, i32
  }
  func.func @transform_2(%arg0: i32) -> (i32, i32) {
    %c0_i32 = arith.constant 0 : i32
    %c0_i32_0 = arith.constant 0 : i32
    %c0_i32_1 = arith.constant 0 : i32
    return %c0_i32, %c0_i32_0 : i32, i32
  }
  func.func @transform_3(%arg0: i32) -> (i32, i32) {
    %c0_i32 = arith.constant 0 : i32
    %c0_i32_0 = arith.constant 0 : i32
    %c0_i32_1 = arith.constant 0 : i32
    return %c0_i32, %c0_i32_0 : i32, i32
  }
  func.func @transform_4(%arg0: i32) -> (i32, i32) {
    %c0_i32 = arith.constant 0 : i32
    %c0_i32_0 = arith.constant 0 : i32
    %c0_i32_1 = arith.constant 0 : i32
    return %c0_i32, %c0_i32_0 : i32, i32
  }
  func.func @transform_5(%arg0: i32) -> (i32, i32) {
    %c0_i32 = arith.constant 0 : i32
    %c0_i32_0 = arith.constant 0 : i32
    %c0_i32_1 = arith.constant 0 : i32
    return %c0_i32, %c0_i32_0 : i32, i32
  }
  func.func @transform_6(%arg0: i32) -> (i32, i32) {
    %c0_i32 = arith.constant 0 : i32
    %c0_i32_0 = arith.constant 0 : i32
    %c0_i32_1 = arith.constant 0 : i32
    return %c0_i32, %c0_i32_0 : i32, i32
  }
  func.func @transform_7(%arg0: i32) -> (i32, i32) {
    %c0_i32 = arith.constant 0 : i32
    %c0_i32_0 = arith.constant 0 : i32
    return %arg0, %c0_i32 : i32, i32
  }
}

</mosaic_0001>

<bundles_post_ra>
// kernel: discriminator_forward.1
= control target key start
LH: loop header
LB: loop body
LE: loop exit
PB: predicated region body
PF: predicated region fallthrough
CT: control target
= control target key end

     0   :  { %vm1135_vm0 = vmmov 0   ;;  %vm760_vm1 = vcmask 261120   ;;  %s1445_s1 = inlined_call_operand.vmem [shape: bf16[1024,32], index: 1, kind: input, shape index: {}]   ;;  %s1446_s0 = inlined_call_operand.vmem [shape: f32[16,1024], index: 0, kind: input, shape index: {}]   ;;  %s1447_s3 = inlined_call_operand.vmem [shape: bf16[32,32], index: 3, kind: input, shape index: {}]   ;;  %s1448_s2 = inlined_call_operand.vmem [shape: f32[1,32], index: 2, kind: input, shape index: {}]   ;;  %s1449_s5 = inlined_call_operand.vmem [shape: bf16[32,128], index: 5, kind: input, shape index: {}]   ;;  %s1450_s4 = inlined_call_operand.vmem [shape: f32[1,32], index: 4, kind: input, shape index: {}]   ;;  %s1451_s6 = inlined_call_operand.vmem [shape: f32[1,128], index: 6, kind: input, shape index: {}]   ;;  %s1452_s7 = inlined_call_operand.vmem [shape: f32[16,128], index: 7, kind: output, shape index: {}]  }
   0x1   :  { %v1066_v0 = vld [vmem:[%s1445_s1 + $0x40] sm:$0xff]   ;;  %v1070_v4 = vld [vmem:[%s1445_s1 + $0x48] sm:$0xff]   ;;  %v1074_v8 = vld [vmem:[%s1445_s1 + $0x50] sm:$0xff]  }
   0x2   :  { %v1067_v1 = vld [vmem:[%s1445_s1 + $0xc0] sm:$0xff]   ;;  %954 = vmatprep.subr.bf16.mxu0 %v1066_v0  ;;  %v1071_v5 = vld [vmem:[%s1445_s1 + $0xc8] sm:$0xff]   ;;  %v1075_v9 = vld [vmem:[%s1445_s1 + $0xd0] sm:$0xff]  }
   0x3   :  { %v1068_v2 = vld [vmem:[%s1445_s1] sm:$0xff]   ;;  %976 = vmatprep.subr.bf16.mxu1 %v1067_v1  ;;  %v1072_v6 = vld [vmem:[%s1445_s1 + $0x8] sm:$0xff]   ;;  %v1076_v10 = vld [vmem:[%s1445_s1 + $0x10] sm:$0xff]  }
   0x4   :  { %v1069_v3 = vld [vmem:[%s1445_s1 + $0x80] sm:$0xff]   ;;  %955 = vmatpush3.bf16.msra.mxu0 %v1068_v2  ;;  %v1073_v7 = vld [vmem:[%s1445_s1 + $0x88] sm:$0xff]   ;;  %v1077_v11 = vld [vmem:[%s1445_s1 + $0x90] sm:$0xff]  }
   0x5   :  { %977 = vmatpush3.bf16.msra.mxu1 %v1069_v3  ;;  %956 = vmatprep.subr.bf16.mxu0 %v1070_v4  ;;  %v1078_v12 = vld [vmem:[%s1445_s1 + $0x58] sm:$0xff]   ;;  %v1082_v16 = vld [vmem:[%s1445_s1 + $0x60] sm:$0xff]   ;;  %v1086_v20 = vld [vmem:[%s1445_s1 + $0x68] sm:$0xff]  }
   0x6   :  { %978 = vmatprep.subr.bf16.mxu1 %v1071_v5  ;;  %v1079_v13 = vld [vmem:[%s1445_s1 + $0xd8] sm:$0xff]   ;;  %v1083_v17 = vld [vmem:[%s1445_s1 + $0xe0] sm:$0xff]   ;;  %v1087_v21 = vld [vmem:[%s1445_s1 + $0xe8] sm:$0xff]  }
   0x7   :  { %v1080_v14 = vld [vmem:[%s1445_s1 + $0x18] sm:$0xff]   ;;  %v1084_v18 = vld [vmem:[%s1445_s1 + $0x20] sm:$0xff]   ;;  %v1088_v22 = vld [vmem:[%s1445_s1 + $0x28] sm:$0xff]  }
   0x8   :  { %957 = vmatpush3.bf16.msra.mxu0 %v1072_v6  ;;  %v1081_v15 = vld [vmem:[%s1445_s1 + $0x98] sm:$0xff]   ;;  %v1085_v19 = vld [vmem:[%s1445_s1 + $0xa0] sm:$0xff]   ;;  %v1089_v23 = vld [vmem:[%s1445_s1 + $0xa8] sm:$0xff]  }
   0x9   :  { %979 = vmatpush3.bf16.msra.mxu1 %v1073_v7  ;;  %958 = vmatprep.subr.bf16.mxu0 %v1074_v8  ;;  %v1090_v24 = vld [vmem:[%s1445_s1 + $0x70] sm:$0xff]   ;;  %v1094_v28 = vld [vmem:[%s1445_s1 + $0x78] sm:$0xff]   ;;  %v28_v32 = vld [vmem:[%s1446_s0 + $0x8] sm:$0xff] }
   0xa   :  { %980 = vmatprep.subr.bf16.mxu1 %v1075_v9  ;;  %v1091_v25 = vld [vmem:[%s1445_s1 + $0xf0] sm:$0xff]   ;;  %v1095_v29 = vld [vmem:[%s1445_s1 + $0xf8] sm:$0xff]   ;;  %v36_v33 = vld [vmem:[%s1446_s0 + $0x48] sm:$0xff] }
   0xb   :  { %v1092_v26 = vld [vmem:[%s1445_s1 + $0x30] sm:$0xff]   ;;  %v1096_v30 = vld [vmem:[%s1445_s1 + $0x38] sm:$0xff]   ;;  %v44_v35 = vpack.c.bf16 %v36_v33, %v28_v32  ;;  %v27_v37 = vld [vmem:[%s1446_s0] sm:$0xff] }
   0xc   :  { %959 = vmatpush3.bf16.msra.mxu0 %v1076_v10  ;;  %v1093_v27 = vld [vmem:[%s1445_s1 + $0xb0] sm:$0xff]   ;;  %v1097_v31 = vld [vmem:[%s1445_s1 + $0xb8] sm:$0xff]   ;;  %v35_v38 = vld [vmem:[%s1446_s0 + $0x40] sm:$0xff] }
   0xd   :  { %981 = vmatpush3.bf16.msra.mxu1 %v1077_v11  ;;  %960 = vmatprep.subr.bf16.mxu0 %v1078_v12  ;;  %v30_v34 = vld [vmem:[%s1446_s0 + $0x18] sm:$0xff]  ;;  %v43_v40 = vpack.c.bf16 %v35_v38, %v27_v37  ;;  %v29_v41 = vld [vmem:[%s1446_s0 + $0x10] sm:$0xff]  ;;  %v1098_v44 = vld [vmem:[%s1445_s1 + $0x140] sm:$0xff]  }
   0xe   :  { %982 = vmatprep.subr.bf16.mxu1 %v1079_v13  ;;  %v38_v36 = vld [vmem:[%s1446_s0 + $0x58] sm:$0xff]  ;;  %v37_v42 = vld [vmem:[%s1446_s0 + $0x50] sm:$0xff]  ;;  %602 = vmatprep.mubr.bf16.mxu0 %v44_v35  ;;  %v1099_v45 = vld [vmem:[%s1445_s1 + $0x1c0] sm:$0xff]  }
   0xf   :  { %v46_v39 = vpack.c.bf16 %v38_v36, %v30_v34  ;;  %v45_v43 = vpack.c.bf16 %v37_v42, %v29_v41  ;;  %v1100_v46 = vld [vmem:[%s1445_s1 + $0x100] sm:$0xff]   ;;  %v1102_v48 = vld [vmem:[%s1445_s1 + $0x148] sm:$0xff]   ;;  %v1106_v52 = vld [vmem:[%s1445_s1 + $0x150] sm:$0xff]  }
  0x10   :  { %961 = vmatpush3.bf16.msra.mxu0 %v1080_v14  ;;  %v1101_v47 = vld [vmem:[%s1445_s1 + $0x180] sm:$0xff]   ;;  %v1103_v49 = vld [vmem:[%s1445_s1 + $0x1c8] sm:$0xff]   ;;  %v1107_v53 = vld [vmem:[%s1445_s1 + $0x1d0] sm:$0xff]  }
  0x11   :  { %983 = vmatpush3.bf16.msra.mxu1 %v1081_v15  ;;  %962 = vmatprep.subr.bf16.mxu0 %v1082_v16  ;;  %v1104_v50 = vld [vmem:[%s1445_s1 + $0x108] sm:$0xff]   ;;  %v1108_v54 = vld [vmem:[%s1445_s1 + $0x110] sm:$0xff]   ;;  %v1110_v56 = vld [vmem:[%s1445_s1 + $0x158] sm:$0xff]  }
  0x12   :  { %984 = vmatprep.subr.bf16.mxu1 %v1083_v17  ;;  %643 = vmatprep.mubr.bf16.mxu1 %v46_v39  ;;  %v1105_v51 = vld [vmem:[%s1445_s1 + $0x188] sm:$0xff]   ;;  %v1109_v55 = vld [vmem:[%s1445_s1 + $0x190] sm:$0xff]   ;;  %v1111_v57 = vld [vmem:[%s1445_s1 + $0x1d8] sm:$0xff]  }
  0x13   :  { %v1112_v58 = vld [vmem:[%s1445_s1 + $0x118] sm:$0xff]   ;;  %v1114_v60 = vld [vmem:[%s1445_s1 + $0x160] sm:$0xff]   ;;  %v1118_v0 = vld [vmem:[%s1445_s1 + $0x168] sm:$0xff]  }
  0x14   :  { %963 = vmatpush3.bf16.msra.mxu0 %v1084_v18  ;;  %v1113_v59 = vld [vmem:[%s1445_s1 + $0x198] sm:$0xff]   ;;  %v1115_v61 = vld [vmem:[%s1445_s1 + $0x1e0] sm:$0xff]   ;;  %v1119_v1 = vld [vmem:[%s1445_s1 + $0x1e8] sm:$0xff]  }
  0x15   :  { %985 = vmatpush3.bf16.msra.mxu1 %v1085_v19  ;;  %964 = vmatprep.subr.bf16.mxu0 %v1086_v20  ;;  %v1116_v62 = vld [vmem:[%s1445_s1 + $0x120] sm:$0xff]   ;;  %v1120_v2 = vld [vmem:[%s1445_s1 + $0x128] sm:$0xff]   ;;  %v1122_v4 = vld [vmem:[%s1445_s1 + $0x170] sm:$0xff]  }
  0x16   :  { %986 = vmatprep.subr.bf16.mxu1 %v1087_v21  ;;  %v1117_v63 = vld [vmem:[%s1445_s1 + $0x1a0] sm:$0xff]   ;;  %v1121_v3 = vld [vmem:[%s1445_s1 + $0x1a8] sm:$0xff]   ;;  %v1123_v5 = vld [vmem:[%s1445_s1 + $0x1f0] sm:$0xff]  }
  0x17   :  { %v1124_v6 = vld [vmem:[%s1445_s1 + $0x130] sm:$0xff]   ;;  %v1126_v8 = vld [vmem:[%s1445_s1 + $0x178] sm:$0xff]   ;;  %v32_v12 = vld [vmem:[%s1446_s0 + $0x28] sm:$0xff] }
  0x18   :  { %965 = vmatpush3.bf16.msra.mxu0 %v1088_v22  ;;  %v1125_v7 = vld [vmem:[%s1445_s1 + $0x1b0] sm:$0xff]   ;;  %v1127_v9 = vld [vmem:[%s1445_s1 + $0x1f8] sm:$0xff]   ;;  %v40_v13 = vld [vmem:[%s1446_s0 + $0x68] sm:$0xff] }
  0x19   :  { %987 = vmatpush3.bf16.msra.mxu1 %v1089_v23  ;;  %966 = vmatprep.subr.bf16.mxu0 %v1090_v24  ;;  %v1128_v10 = vld [vmem:[%s1445_s1 + $0x138] sm:$0xff]   ;;  %v48_v16 = vpack.c.bf16 %v40_v13, %v32_v12  ;;  %v31_v18 = vld [vmem:[%s1446_s0 + $0x20] sm:$0xff]  ;;  %v33_v20 = vld [vmem:[%s1446_s0 + $0x30] sm:$0xff] }
  0x1a   :  { %988 = vmatprep.subr.bf16.mxu1 %v1091_v25  ;;  %v1129_v11 = vld [vmem:[%s1445_s1 + $0x1b8] sm:$0xff]   ;;  %v39_v19 = vld [vmem:[%s1446_s0 + $0x60] sm:$0xff]  ;;  %v41_v22 = vld [vmem:[%s1446_s0 + $0x70] sm:$0xff]  ;;  %v1134_v25 = vmov 0.0  }
  0x1b   :  { %v34_v14 = vld [vmem:[%s1446_s0 + $0x38] sm:$0xff]  ;;  %v47_v21 = vpack.c.bf16 %v39_v19, %v31_v18  ;;  %v49_v23 = vpack.c.bf16 %v41_v22, %v33_v20  ;;  %v1130_v24 = vld [vmem:[%s1447_s3] sm:$0xff]  }
  0x1c   :  { %967 = vmatpush3.bf16.msra.mxu0 %v1092_v26  ;;  %v42_v15 = vld [vmem:[%s1446_s0 + $0x78] sm:$0xff]  ;;  %v1131_v26 = vld [vmem:[%s1447_s3 + $0x8] sm:$0xff]  }
  0x1d   :  { %989 = vmatpush3.bf16.msra.mxu1 %v1093_v27  ;;  %968 = vmatprep.subr.bf16.mxu0 %v1094_v28  ;;  %v50_v17 = vpack.c.bf16 %v42_v15, %v34_v14 }
  0x1e   :  { %990 = vmatprep.subr.bf16.mxu1 %v1095_v29  ;;  %v881_v29 = vld [vmem:[%s1448_s2] ss:$0 sm:$0xff] }
  0x20   :  { %969 = vmatpush3.bf16.msra.mxu0 %v1096_v30 }
  0x21   :  { %991 = vmatpush3.bf16.msra.mxu1 %v1097_v31  ;;  %998 = vmatprep.subr.bf16.mxu0 %v1098_v44 }
  0x22   :  { %1020 = vmatprep.subr.bf16.mxu1 %v1099_v45 }
  0x23   :  { %603 = vmatmul.mubr.bf16.vlgmr.msra.gmra.mrb[0].mxu0 %v43_v40 }
  0x24   :  { %644 = vmatmul.mubr.bf16.vlgmr.msra.gmra.mrb[0].mxu1 %v45_v43  ;;  %999 = vmatpush3.bf16.msra.mxu0 %v1100_v46 }
  0x25   :  { %1021 = vmatpush3.bf16.msra.mxu1 %v1101_v47  ;;  %1000 = vmatprep.subr.bf16.mxu0 %v1102_v48 }
  0x26   :  { %1022 = vmatprep.subr.bf16.mxu1 %v1103_v49  ;;  %684 = vmatprep.mubr.bf16.mxu0 %v48_v16 }
  0x27   :  { %725 = vmatprep.mubr.bf16.mxu1 %v50_v17 }
  0x28   :  { %1001 = vmatpush3.bf16.msra.mxu0 %v1104_v50 }
  0x29   :  { %1023 = vmatpush3.bf16.msra.mxu1 %v1105_v51  ;;  %1002 = vmatprep.subr.bf16.mxu0 %v1106_v52 }
  0x2a   :  { %1024 = vmatprep.subr.bf16.mxu1 %v1107_v53 }
  0x2c   :  { %1003 = vmatpush3.bf16.msra.mxu0 %v1108_v54 }
  0x2d   :  { %1025 = vmatpush3.bf16.msra.mxu1 %v1109_v55  ;;  %1004 = vmatprep.subr.bf16.mxu0 %v1110_v56 }
  0x2e   :  { %1026 = vmatprep.subr.bf16.mxu1 %v1111_v57 }
  0x30   :  { %1005 = vmatpush3.bf16.msra.mxu0 %v1112_v58 }
  0x31   :  { %1027 = vmatpush3.bf16.msra.mxu1 %v1113_v59  ;;  %1006 = vmatprep.subr.bf16.mxu0 %v1114_v60 }
  0x32   :  { %1028 = vmatprep.subr.bf16.mxu1 %v1115_v61 }
  0x34   :  { %1007 = vmatpush3.bf16.msra.mxu0 %v1116_v62 }
  0x35   :  { %1029 = vmatpush3.bf16.msra.mxu1 %v1117_v63  ;;  %1008 = vmatprep.subr.bf16.mxu0 %v1118_v0  ;;  %v1132_v63 = vld [vmem:[%s1449_s5] sm:$0xff]   ;;  %v1133_v0 = vld [vmem:[%s1449_s5 + $0x8] sm:$0xff]  }
  0x36   :  { %1030 = vmatprep.subr.bf16.mxu1 %v1119_v1  ;;  %v946_v1 = vld [vmem:[%s1450_s4] ss:$0 sm:$0xff] }
  0x38   :  { %1009 = vmatpush3.bf16.msra.mxu0 %v1120_v2 }
  0x39   :  { %1031 = vmatpush3.bf16.msra.mxu1 %v1121_v3  ;;  %1010 = vmatprep.subr.bf16.mxu0 %v1122_v4 }
  0x3a   :  { %1032 = vmatprep.subr.bf16.mxu1 %v1123_v5 }
  0x3c   :  { %1011 = vmatpush3.bf16.msra.mxu0 %v1124_v6 }
  0x3d   :  { %1033 = vmatpush3.bf16.msra.mxu1 %v1125_v7  ;;  %1012 = vmatprep.subr.bf16.mxu0 %v1126_v8 }
  0x3e   :  { %1034 = vmatprep.subr.bf16.mxu1 %v1127_v9 }
  0x40   :  { %1013 = vmatpush3.bf16.msra.mxu0 %v1128_v10 }
  0x41   :  { %1035 = vmatpush3.bf16.msra.mxu1 %v1129_v11  ;;  %1048 = vmatprep.subr.bf16.mxu0 %v1134_v25  ;;  %v950_v11 = vld [vmem:[%s1451_s6] ss:$0 sm:$0xff] }
  0x42   :  { %1056 = vmatprep.subr.bf16.mxu1 %v1134_v25 }
  0x43   :  { %685 = vmatmul.mubr.bf16.vlgmr.msra.gmra.mrb[4].mxu0 %v47_v21 }
  0x44   :  { %726 = vmatmul.mubr.bf16.vlgmr.msra.gmra.mrb[4].mxu1 %v49_v23  ;;  %1049 = vmatpush3.bf16.msra.mxu0 %v1130_v24 }
  0x45   :  { %1050 = vmatprep.subr.bf16.mxu0 %v1134_v25  ;;  %1052 = vmatprep.mubr.msk.bf16.mxu0 %vm1135_vm0, %v1134_v25 }
  0x46   :  { %1060 = vmatprep.mubr.msk.bf16.mxu1 %vm1135_vm0, %v1134_v25  ;;  %1057 = vmatpush3.bf16.msra.mxu1 %v1132_v63 }
  0x47   :  { %1058 = vmatprep.subr.bf16.mxu1 %v1134_v25 }
  0x48   :  { %1051 = vmatpush3.bf16.msra.mxu0 %v1131_v26 }
  0x4a   :  { %1059 = vmatpush3.bf16.msra.mxu1 %v1133_v0 }
  0xf6   :  { %v970_v27 = vpop.f32.mrb[0].mxu0 }
  0xf7   :  { %v992_v28 = vpop.f32.mrb[0].mxu1  ;;  %v971_v30 = vpop.f32.mrb[1].mxu0 }
  0xf8   :  { %v972_v31 = vadd.f32 %v971_v30, %v970_v27  ;;  %v993_v32 = vpop.f32.mrb[1].mxu1  ;;  %v973_v33 = vpop.f32.mrb[2].mxu0 }
  0xf9   :  { %v994_v34 = vadd.f32 %v993_v32, %v992_v28  ;;  %v995_v35 = vpop.f32.mrb[2].mxu1  ;;  %v974_v36 = vpop.f32.mrb[3].mxu0 }
  0xfa   :  { %v605_v37 = vadd.f32 %v972_v31, %v881_v29  ;;  %v975_v38 = vadd.f32 %v974_v36, %v973_v33  ;;  %v996_v39 = vpop.f32.mrb[3].mxu1 }
  0xfb   :  { %v997_v40 = vadd.f32 %v996_v39, %v995_v35 }
  0xfc   :  { %v646_v41 = vadd.f32 %v994_v34, %v605_v37  ;;  %v608_v42 = vadd.f32 %v975_v38, %v881_v29 }
  0xfe   :  { %v649_v43 = vadd.f32 %v997_v40, %v608_v42 }
 0x116   :  { %v1014_v44 = vpop.f32.mrb[4].mxu0 }
 0x117   :  { %v1036_v45 = vpop.f32.mrb[4].mxu1  ;;  %v1015_v46 = vpop.f32.mrb[5].mxu0 }
 0x118   :  { %v1016_v47 = vadd.f32 %v1015_v46, %v1014_v44  ;;  %v1037_v48 = vpop.f32.mrb[5].mxu1  ;;  %v1017_v49 = vpop.f32.mrb[6].mxu0 }
 0x119   :  { %v1038_v50 = vadd.f32 %v1037_v48, %v1036_v45  ;;  %v1039_v51 = vpop.f32.mrb[6].mxu1  ;;  %v1018_v52 = vpop.f32.mrb[7].mxu0 }
 0x11a   :  { %v687_v53 = vadd.f32 %v1016_v47, %v646_v41  ;;  %v1019_v54 = vadd.f32 %v1018_v52, %v1017_v49  ;;  %v1040_v55 = vpop.f32.mrb[7].mxu1 }
 0x11b   :  { %v1041_v56 = vadd.f32 %v1040_v55, %v1039_v51 }
 0x11c   :  { %v728_v57 = vadd.f32 %v1038_v50, %v687_v53  ;;  %v690_v58 = vadd.f32 %v1019_v54, %v649_v43 }
 0x11e   :  { %v731_v59 = vadd.f32 %v1041_v56, %v690_v58  ;;  %v734_v60 = vmax.f32 %v728_v57, 0.0 }
 0x120   :  { %v735_v61 = vmax.f32 %v731_v59, 0.0 }
 0x122   :  { %v736_v62 = vpack.c.bf16 %v735_v61, %v734_v60 }
 0x124   :  { %1053 = vmatmul.mubr.msk.bf16.vlgmr.msra.gmra.mrb[8].mxu0 %vm760_vm1, %v736_v62 }
 0x1f7   :  { %v798_v2 = vpop.f32.mrb[8].mxu0 }
 0x1f8   :  { %v799_v3 = vadd.f32 %v946_v1, %v798_v2  ;;  %v1054_v4 = vpop.f32.mrb[9].mxu0 }
 0x1f9   :  { %v801_v5 = vpop.f32.mrb[10].mxu0 }
 0x1fa   :  { %v802_v6 = vadd.f32 %v946_v1, %v801_v5  ;;  %v1055_v7 = vpop.f32.mrb[11].mxu0  ;;  %v805_v8 = vmax.f32 %v799_v3, 0.0 }
 0x1fc   :  { %v806_v9 = vmax.f32 %v802_v6, 0.0 }
 0x1fe   :  { %v807_v10 = vpack.c.bf16 %v806_v9, %v805_v8 }
 0x200   :  { %1061 = vmatmul.mubr.msk.bf16.vlgmr.msra.gmra.mrb[8].mxu1 %vm760_vm1, %v807_v10 }
 0x2d3   :  { %v868_v12 = vpop.f32.mrb[8].mxu1 }
 0x2d4   :  { %v869_v13 = vadd.f32 %v950_v11, %v868_v12  ;;  %v1062_v14 = vpop.f32.mrb[9].mxu1 }
 0x2d5   :  { %v871_v15 = vpop.f32.mrb[10].mxu1 }
 0x2d6   :  { %875 = vst [vmem:[%s1452_s7] sm:$0xff] %v869_v13  ;;  %v872_v16 = vadd.f32 %v950_v11, %v871_v15  ;;  %v1063_v17 = vpop.f32.mrb[11].mxu1 }
 0x2d8   :  { %876 = vst [vmem:[%s1452_s7 + $0x8] sm:$0xff] %v872_v16 }

</bundles_post_ra>
